<compile_context>
chip_gen: v5e
topology: v5e:2x2
jax: 0.10.0
libtpu: 0.0.40
codegen_flags: <defaults>
</compile_context>

<pallas_src>
import functools
import math

import jax
import jax.numpy as jnp
from jax import lax
from jax.experimental import pallas as pl
from jax.experimental.pallas import tpu as pltpu


def _layer_norm(x, gamma, beta, eps=1e-5):
    mean = jnp.mean(x, axis=-1, keepdims=True)
    var = jnp.mean((x - mean) ** 2, axis=-1, keepdims=True)
    return (x - mean) * lax.rsqrt(var + eps) * gamma + beta


def transformer_kernel(x_ref, wqkv_ref, wo_ref, w1_ref, w2_ref, vec_ref,
                       o_ref, x_sc,
                       *, n_head, bt, seq, d_model, d_inner):
    l = pl.program_id(1)                       # layer axis (innermost, "arbitrary")
    n_layer = pl.num_programs(1)
    dh = d_model // n_head
    n_rows = bt * seq                          # tokens processed per grid step
    hb = n_head * bt                           # batched attention leading dim

    # Load the activation slab into the f32 VMEM carry at the first layer.
    @pl.when(l == 0)
    def _():
        x_sc[...] = x_ref[...].astype(jnp.float32)

    x = x_sc[...]                              # (N, D) f32, N = bt*seq

    # Packed per-layer small vectors (single DMA): rows are
    # [bqkv, bo, b1, b2, ln1_g, ln1_b, ln2_g, ln2_b], zero-padded to W lanes.
    bqkv = vec_ref[0:1, :3 * d_model]
    bo = vec_ref[1:2, :d_model]
    b1 = vec_ref[2:3, :d_inner]
    b2 = vec_ref[3:4, :d_model]
    ln1g = vec_ref[4:5, :d_model]
    ln1b = vec_ref[5:6, :d_model]
    ln2g = vec_ref[6:7, :d_model]
    ln2b = vec_ref[7:8, :d_model]

    # ---- fused QKV projection (bf16 MXU, f32 accumulate). Scale 1/sqrt(dh) is
    # already folded into the Q columns of wqkv/bqkv at parameter-prep time. ----
    qkv = jnp.dot(x.astype(jnp.bfloat16), wqkv_ref[...],
                  preferred_element_type=jnp.float32) + bqkv            # (N, 3D)
    qkvb = qkv.astype(jnp.bfloat16).reshape(bt, seq, 3 * d_model)

    # Head-major stacks (n_head*bt, S, dh) built from lane slices concatenated
    # along the (cheap) major dim; index = h*bt + b.
    q3 = jnp.concatenate(
        [qkvb[:, :, h * dh:(h + 1) * dh] for h in range(n_head)], axis=0)
    k3 = jnp.concatenate(
        [qkvb[:, :, d_model + h * dh:d_model + (h + 1) * dh]
         for h in range(n_head)], axis=0)
    v3 = jnp.concatenate(
        [qkvb[:, :, 2 * d_model + h * dh:2 * d_model + (h + 1) * dh]
         for h in range(n_head)], axis=0)

    # ---- batched attention scores over all (head, batch) pairs; no explicit
    # transpose (contraction over dh handled by dot_general). ----
    s = jnp.einsum('bqd,bkd->bqk', q3, k3,
                   preferred_element_type=jnp.float32)                  # (HB, S, S)

    # Causal condition from a single 2-D compare, broadcast over the HB dim.
    row = lax.broadcasted_iota(jnp.int32, (seq, seq), 0)
    col = lax.broadcasted_iota(jnp.int32, (seq, seq), 1)
    s = jnp.where(col <= row, s, -1e30)

    m = jnp.max(s, axis=-1, keepdims=True)
    p = jnp.exp(s - m)
    denom = jnp.sum(p, axis=-1, keepdims=True)
    p = p * pl.reciprocal(denom, approx=True)                           # EUP divide

    o3 = jnp.einsum('bqk,bkd->bqd', p.astype(jnp.bfloat16), v3,
                    preferred_element_type=jnp.float32)                 # (HB, S, dh)

    # Output projection as a per-head accumulate — no masked lane stores and no
    # head-recombination scratch; each head hits a sublane slice of wo.
    attn = jnp.dot(o3[0:bt].reshape(n_rows, dh).astype(jnp.bfloat16),
                   wo_ref[0:dh, :], preferred_element_type=jnp.float32)
    for h in range(1, n_head):
        oh = o3[h * bt:(h + 1) * bt].reshape(n_rows, dh).astype(jnp.bfloat16)
        attn = attn + jnp.dot(oh, wo_ref[h * dh:(h + 1) * dh, :],
                              preferred_element_type=jnp.float32)
    attn = attn + bo

    # residual + LayerNorm (post-norm); dropout is identity in eval mode.
    x1 = _layer_norm(x + attn, ln1g, ln1b)

    # ---- feed-forward (relu) ----
    h1 = jnp.dot(x1.astype(jnp.bfloat16), w1_ref[...],
                 preferred_element_type=jnp.float32) + b1
    h1 = jnp.maximum(h1, 0.0)
    ff = jnp.dot(h1.astype(jnp.bfloat16), w2_ref[...],
                 preferred_element_type=jnp.float32) + b2

    x2 = _layer_norm(x1 + ff, ln2g, ln2b)

    @pl.when(l < n_layer - 1)
    def _():
        x_sc[...] = x2                          # carry to the next layer

    @pl.when(l == n_layer - 1)
    def _():
        o_ref[...] = x2.astype(o_ref.dtype)


# ---------------- VMEM-budget-driven batch-tile selection ----------------
def _vmem_capacity_bytes():
    try:
        return int(pltpu.get_tpu_info().vmem_capacity_bytes)
    except Exception:
        return 64 * 1024 * 1024   # conservative fallback (v7x physical per-TC VMEM)


def _estimate_vmem_bytes(bt, seq, d_model, d_inner, n_head):
    """Rough per-grid-step VMEM footprint estimate (bytes)."""
    n_rows = bt * seq
    hb = n_head * bt
    io = 2 * 2 * n_rows * d_model * 4                               # dbl-buf x in + out (f32)
    carry = n_rows * d_model * 4                                    # activation scratch
    weights = 2 * 2 * (d_model * 3 * d_model + d_model * d_model
                       + 2 * d_model * d_inner)                     # dbl-buf bf16 weights
    vecs = 2 * 8 * max(3 * d_model, d_inner, 128) * 4
    inter = (n_rows * 3 * d_model * (4 + 2)                         # qkv f32 + bf16
             + 3 * n_rows * d_model * 2                             # q3/k3/v3 bf16
             + hb * seq * seq * (4 + 4 + 2)                         # s, p f32 + p bf16
             + n_rows * d_model * 4                                 # o3 f32
             + n_rows * d_inner * (4 + 2)                           # h1 f32 + bf16
             + 3 * n_rows * d_model * 4)                            # x1/ff/x2 live
    return io + carry + weights + vecs + inter


def _pick_batch_tile(batch, seq, d_model, d_inner, n_head, budget_bytes):
    """Largest divisor of `batch` whose estimated footprint fits the budget and whose
    (bt*seq) row count is 8-aligned (or the full batch, which is always legal)."""
    valid = [c for c in range(1, batch + 1)
             if batch % c == 0 and (c == batch or (c * seq) % 8 == 0)]
    fitting = [c for c in valid
               if _estimate_vmem_bytes(c, seq, d_model, d_inner, n_head) <= budget_bytes]
    return max(fitting) if fitting else min(valid)


def vanilla_transformer_forward(src, prep, n_head, *, batch_tile=None):
    # TODO(synk): src_len / key-padding-mask branch not implemented (src_len=None path only).
    B, S, D = src.shape
    n_layer = prep["wqkv"].shape[0]
    d_inner = prep["w1"].shape[2]
    W = prep["vecs"].shape[2]
    assert D % n_head == 0

    # Generation-aware VMEM sizing: ~80% of physical for the scoped limit,
    # ~60% of that as the tile-selection budget (headroom for compiler scratch).
    vmem_cap = _vmem_capacity_bytes()
    vmem_limit = int(vmem_cap * 0.8)
    tile_budget = int(vmem_limit * 0.6)

    bt = (_pick_batch_tile(B, S, D, d_inner, n_head, tile_budget)
          if batch_tile is None else batch_tile)
    assert B % bt == 0
    n_bt = B // bt
    n_rows = bt * S

    # Lane/sublane-dense 2-D slab in/out; the reshape is wrapper-side plumbing.
    x2d = src.reshape(B * S, D)

    def wspec(shape):
        # Per-layer weight block; the leading layer dim is squeezed away.
        return pl.BlockSpec((None,) + shape,
                            lambda i, l, _nd=len(shape): (l,) + (0,) * _nd)

    out2d = pl.pallas_call(
        functools.partial(transformer_kernel, n_head=n_head, bt=bt, seq=S,
                          d_model=D, d_inner=d_inner),
        out_shape=jax.ShapeDtypeStruct((B * S, D), src.dtype),
        grid=(n_bt, n_layer),
        in_specs=[
            pl.BlockSpec((n_rows, D), lambda i, l: (i, 0)),          # x slab
            wspec((D, 3 * D)),                                       # in_proj W^T
            wspec((D, D)),                                           # out_proj W^T
            wspec((D, d_inner)),                                     # linear1 W^T
            wspec((d_inner, D)),                                     # linear2 W^T
            wspec((8, W)),                                           # packed small vectors
        ],
        out_specs=pl.BlockSpec((n_rows, D), lambda i, l: (i, 0)),
        scratch_shapes=[
            pltpu.VMEM((n_rows, D), jnp.float32),    # activation carry across layers
        ],
        compiler_params=pltpu.CompilerParams(
            dimension_semantics=("parallel", "arbitrary"),
            vmem_limit_bytes=vmem_limit,
        ),
    )(x2d, prep["wqkv"], prep["wo"], prep["w1"], prep["w2"], prep["vecs"])

    return out2d.reshape(B, S, D)


# ---------------- parameter prep (PyTorch layout -> kernel layout) ----------------
def prepare_params(params, n_head):
    d_model = params[0]["in_proj_w"].shape[1]
    d_inner = params[0]["lin1_w"].shape[0]
    dh = d_model // n_head
    scale = 1.0 / math.sqrt(dh)
    # Packed-vector lane width, rounded up to a 128-lane multiple.
    W = ((max(3 * d_model, d_inner, d_model) + 127) // 128) * 128

    def stack(fn):
        return jnp.stack([fn(p) for p in params], axis=0)

    def fold_w(w):                              # (3D, D) -> (D, 3D), Q cols pre-scaled
        return w.T.at[:, :d_model].multiply(scale)

    def fold_b(b):                              # (3D,) -> Q part pre-scaled
        return b.at[:d_model].multiply(scale)

    def pack_vecs(p):
        def pad(v):
            return jnp.pad(v, (0, W - v.shape[0]))
        return jnp.stack([
            pad(fold_b(p["in_proj_b"])),        # row 0: bqkv
            pad(p["out_proj_b"]),               # row 1: bo
            pad(p["lin1_b"]),                   # row 2: b1
            pad(p["lin2_b"]),                   # row 3: b2
            pad(p["ln1_g"]),                    # row 4
            pad(p["ln1_b"]),                    # row 5
            pad(p["ln2_g"]),                    # row 6
            pad(p["ln2_b"]),                    # row 7
        ], axis=0)                              # (8, W)

    return dict(
        wqkv=stack(lambda p: fold_w(p["in_proj_w"])).astype(jnp.bfloat16),  # (L, D, 3D)
        wo=stack(lambda p: p["out_proj_w"].T).astype(jnp.bfloat16),         # (L, D, D)
        w1=stack(lambda p: p["lin1_w"].T).astype(jnp.bfloat16),             # (L, D, d_inner)
        w2=stack(lambda p: p["lin2_w"].T).astype(jnp.bfloat16),             # (L, d_inner, D)
        vecs=stack(pack_vecs).astype(jnp.float32),                          # (L, 8, W)
    )


# ---------------- pure-JAX reference (same bf16 matmul precision) ----------------
def _ref_forward(src, prep, n_head):
    B, S, D = src.shape
    dh = D // n_head
    n_layer = prep["wqkv"].shape[0]
    d_inner = prep["w1"].shape[2]
    x = src.reshape(B * S, D).astype(jnp.float32)
    causal = jnp.arange(S)[None, :] <= jnp.arange(S)[:, None]
    for l in range(n_layer):
        v = prep["vecs"][l]
        bqkv, bo = v[0, :3 * D][None], v[1, :D][None]
        b1, b2 = v[2, :d_inner][None], v[3, :D][None]
        ln1g, ln1b = v[4, :D][None], v[5, :D][None]
        ln2g, ln2b = v[6, :D][None], v[7, :D][None]

        qkv = jnp.dot(x.astype(jnp.bfloat16), prep["wqkv"][l],
                      preferred_element_type=jnp.float32) + bqkv
        qkv = qkv.astype(jnp.bfloat16).reshape(B, S, 3 * D)
        heads = []
        for h in range(n_head):
            qh = qkv[:, :, h * dh:(h + 1) * dh]
            kh = qkv[:, :, D + h * dh:D + (h + 1) * dh]
            vh = qkv[:, :, 2 * D + h * dh:2 * D + (h + 1) * dh]
            s = jnp.einsum('bqd,bkd->bqk', qh, kh, preferred_element_type=jnp.float32)
            s = jnp.where(causal[None], s, -1e30)
            p = jax.nn.softmax(s, axis=-1)
            heads.append(jnp.einsum('bqk,bkd->bqd', p.astype(jnp.bfloat16), vh,
                                    preferred_element_type=jnp.float32))
        attn = jnp.concatenate(heads, axis=-1).reshape(B * S, D)
        attn = jnp.dot(attn.astype(jnp.bfloat16), prep["wo"][l],
                       preferred_element_type=jnp.float32) + bo
        x1 = _layer_norm(x + attn, ln1g, ln1b)
        h1 = jnp.maximum(jnp.dot(x1.astype(jnp.bfloat16), prep["w1"][l],
                                 preferred_element_type=jnp.float32) + b1, 0.0)
        ff = jnp.dot(h1.astype(jnp.bfloat16), prep["w2"][l],
                     preferred_element_type=jnp.float32) + b2
        x = _layer_norm(x1 + ff, ln2g, ln2b)
    return x.reshape(B, S, D)


# ---------------- deterministic parameter init (PyTorch layout) ----------------
def init_params(key, n_layer, d_model, n_head, d_inner):
    params = []
    for _ in range(n_layer):
        key, *ks = jax.random.split(key, 9)
        sc = 0.05
        params.append(dict(
            in_proj_w=jax.random.normal(ks[0], (3 * d_model, d_model), jnp.float32) * sc,
            in_proj_b=jax.random.normal(ks[1], (3 * d_model,), jnp.float32) * sc,
            out_proj_w=jax.random.normal(ks[2], (d_model, d_model), jnp.float32) * sc,
            out_proj_b=jax.random.normal(ks[3], (d_model,), jnp.float32) * sc,
            lin1_w=jax.random.normal(ks[4], (d_inner, d_model), jnp.float32) * sc,
            lin1_b=jax.random.normal(ks[5], (d_inner,), jnp.float32) * sc,
            lin2_w=jax.random.normal(ks[6], (d_model, d_inner), jnp.float32) * sc,
            lin2_b=jax.random.normal(ks[7], (d_model,), jnp.float32) * sc,
            ln1_g=jnp.ones((d_model,), jnp.float32),
            ln1_b=jnp.zeros((d_model,), jnp.float32),
            ln2_g=jnp.ones((d_model,), jnp.float32),
            ln2_b=jnp.zeros((d_model,), jnp.float32),
        ))
    return params


if __name__ == "__main__":
    config = dict(d_model=32, n_head=4, d_inner=64, dropout=0.0,
                  activation="relu", n_layer=2)
    B, S = 2, 8

    key = jax.random.PRNGKey(0)
    k_src, k_param = jax.random.split(key)
    src = jax.random.normal(k_src, (B, S, config["d_model"]), jnp.float32)
    params = init_params(k_param, config["n_layer"], config["d_model"],
                         config["n_head"], config["d_inner"])
    prep = prepare_params(params, config["n_head"])

    out = vanilla_transformer_forward(src, prep, config["n_head"])
    out = jax.block_until_ready(out)

    ref = _ref_forward(src, prep, config["n_head"])
    assert out.shape == (B, S, config["d_model"])
    assert jnp.allclose(out, ref, atol=2e-2, rtol=2e-2), "mismatch vs JAX reference"

    print("KERNEL_OK")
</pallas_src>

<mosaic_0001>
module attributes {stable_mosaic.version = 11 : i64} {
  func.func @transformer_kernel(%arg0: i32, %arg1: i32, %arg2: memref<16x32xf32, #tpu.memory_space<vmem>>, %arg3: memref<1x32x96xbf16, #tpu.memory_space<vmem>>, %arg4: memref<1x32x32xbf16, #tpu.memory_space<vmem>>, %arg5: memref<1x32x64xbf16, #tpu.memory_space<vmem>>, %arg6: memref<1x64x32xbf16, #tpu.memory_space<vmem>>, %arg7: memref<1x8x128xf32, #tpu.memory_space<vmem>>, %arg8: memref<16x32xf32, #tpu.memory_space<vmem>>, %arg9: memref<16x32xf32, #tpu.memory_space<vmem>>) attributes {dimension_semantics = [#tpu.dimension_semantics<parallel>, #tpu.dimension_semantics<arbitrary>], iteration_bounds = array<i64: 1, 2>, scalar_prefetch = 0 : i64, scratch_operands = 1 : i64, tpu.core_type = #tpu.core_type<tc>, window_params = [{transform_indices = @transform_0, window_bounds = array<i64: 16, 32>}, {transform_indices = @transform_1, window_bounds = array<i64: 1, 32, 96>}, {transform_indices = @transform_2, window_bounds = array<i64: 1, 32, 32>}, {transform_indices = @transform_3, window_bounds = array<i64: 1, 32, 64>}, {transform_indices = @transform_4, window_bounds = array<i64: 1, 64, 32>}, {transform_indices = @transform_5, window_bounds = array<i64: 1, 8, 128>}, {transform_indices = @transform_6, window_bounds = array<i64: 16, 32>}]} {
    %c0_i32 = arith.constant 0 : i32
    %0 = arith.cmpi eq, %arg1, %c0_i32 : i32
    %1 = arith.extui %0 : i1 to i32
    %c0_i32_0 = arith.constant 0 : i32
    %2 = arith.cmpi ne, %1, %c0_i32_0 : i32
    scf.if %2 {
      %c0_62 = arith.constant 0 : index
      %c0_63 = arith.constant 0 : index
      %158 = vector.load %arg2[%c0_62, %c0_63] : memref<16x32xf32, #tpu.memory_space<vmem>>, vector<16x32xf32>
      %c0_64 = arith.constant 0 : index
      %c0_65 = arith.constant 0 : index
      %159 = vector.load %arg9[%c0_64, %c0_65] : memref<16x32xf32, #tpu.memory_space<vmem>>, vector<16x32xf32>
      tpu.vector_store %arg9[%c0_64, %c0_65], %158 {strides = array<i32>} : memref<16x32xf32, #tpu.memory_space<vmem>>, vector<16x32xf32>,
    } else {
    }
    %c0 = arith.constant 0 : index
    %c0_1 = arith.constant 0 : index
    %3 = vector.load %arg9[%c0, %c0_1] : memref<16x32xf32, #tpu.memory_space<vmem>>, vector<16x32xf32>
    %c0_2 = arith.constant 0 : index
    %c0_3 = arith.constant 0 : index
    %c0_4 = arith.constant 0 : index
    %4 = vector.load %arg7[%c0_2, %c0_3, %c0_4] : memref<1x8x128xf32, #tpu.memory_space<vmem>>, vector<1x1x96xf32>
    %5 = vector.shape_cast %4 : vector<1x1x96xf32> to vector<1x96xf32>
    %c0_5 = arith.constant 0 : index
    %c1 = arith.constant 1 : index
    %c0_6 = arith.constant 0 : index
    %6 = vector.load %arg7[%c0_5, %c1, %c0_6] : memref<1x8x128xf32, #tpu.memory_space<vmem>>, vector<1x1x32xf32>
    %7 = vector.shape_cast %6 : vector<1x1x32xf32> to vector<1x32xf32>
    %c0_7 = arith.constant 0 : index
    %c2 = arith.constant 2 : index
    %c0_8 = arith.constant 0 : index
    %8 = vector.load %arg7[%c0_7, %c2, %c0_8] : memref<1x8x128xf32, #tpu.memory_space<vmem>>, vector<1x1x64xf32>
    %9 = vector.shape_cast %8 : vector<1x1x64xf32> to vector<1x64xf32>
    %c0_9 = arith.constant 0 : index
    %c3 = arith.constant 3 : index
    %c0_10 = arith.constant 0 : index
    %10 = vector.load %arg7[%c0_9, %c3, %c0_10] : memref<1x8x128xf32, #tpu.memory_space<vmem>>, vector<1x1x32xf32>
    %11 = vector.shape_cast %10 : vector<1x1x32xf32> to vector<1x32xf32>
    %c0_11 = arith.constant 0 : index
    %c4 = arith.constant 4 : index
    %c0_12 = arith.constant 0 : index
    %12 = vector.load %arg7[%c0_11, %c4, %c0_12] : memref<1x8x128xf32, #tpu.memory_space<vmem>>, vector<1x1x32xf32>
    %13 = vector.shape_cast %12 : vector<1x1x32xf32> to vector<1x32xf32>
    %c0_13 = arith.constant 0 : index
    %c5 = arith.constant 5 : index
    %c0_14 = arith.constant 0 : index
    %14 = vector.load %arg7[%c0_13, %c5, %c0_14] : memref<1x8x128xf32, #tpu.memory_space<vmem>>, vector<1x1x32xf32>
    %15 = vector.shape_cast %14 : vector<1x1x32xf32> to vector<1x32xf32>
    %c0_15 = arith.constant 0 : index
    %c6 = arith.constant 6 : index
    %c0_16 = arith.constant 0 : index
    %16 = vector.load %arg7[%c0_15, %c6, %c0_16] : memref<1x8x128xf32, #tpu.memory_space<vmem>>, vector<1x1x32xf32>
    %17 = vector.shape_cast %16 : vector<1x1x32xf32> to vector<1x32xf32>
    %c0_17 = arith.constant 0 : index
    %c7 = arith.constant 7 : index
    %c0_18 = arith.constant 0 : index
    %18 = vector.load %arg7[%c0_17, %c7, %c0_18] : memref<1x8x128xf32, #tpu.memory_space<vmem>>, vector<1x1x32xf32>
    %19 = vector.shape_cast %18 : vector<1x1x32xf32> to vector<1x32xf32>
    %20 = arith.truncf %3 : vector<16x32xf32> to vector<16x32xbf16>
    %c0_19 = arith.constant 0 : index
    %c0_20 = arith.constant 0 : index
    %c0_21 = arith.constant 0 : index
    %21 = vector.load %arg3[%c0_19, %c0_20, %c0_21] : memref<1x32x96xbf16, #tpu.memory_space<vmem>>, vector<1x32x96xbf16>
    %22 = vector.shape_cast %21 : vector<1x32x96xbf16> to vector<32x96xbf16>
    %cst = arith.constant dense<0.000000e+00> : vector<16x96xf32>
    %23 = tpu.matmul %20, %22, %cst {dimension_numbers = #tpu.dot_dimension_numbers<[1], [0], [0], [1], [0, 0, 1, 1], [], []>} : vector<16x32xbf16>, vector<32x96xbf16>, vector<16x96xf32> -> vector<16x96xf32>
    %24 = vector.broadcast %5 : vector<1x96xf32> to vector<16x96xf32>
    %25 = arith.addf %23, %24 : vector<16x96xf32>
    %26 = arith.truncf %25 : vector<16x96xf32> to vector<16x96xbf16>
    %27 = vector.shape_cast %26 : vector<16x96xbf16> to vector<2x8x96xbf16>
    %28 = vector.extract_strided_slice %27 {offsets = [0, 0, 0], sizes = [2, 8, 8], strides = [1, 1, 1]} : vector<2x8x96xbf16> to vector<2x8x8xbf16>
    %29 = vector.extract_strided_slice %27 {offsets = [0, 0, 8], sizes = [2, 8, 8], strides = [1, 1, 1]} : vector<2x8x96xbf16> to vector<2x8x8xbf16>
    %30 = vector.extract_strided_slice %27 {offsets = [0, 0, 16], sizes = [2, 8, 8], strides = [1, 1, 1]} : vector<2x8x96xbf16> to vector<2x8x8xbf16>
    %31 = vector.extract_strided_slice %27 {offsets = [0, 0, 24], sizes = [2, 8, 8], strides = [1, 1, 1]} : vector<2x8x96xbf16> to vector<2x8x8xbf16>
    %32 = tpu.concatenate %28, %29, %30, %31 in 0 : vector<2x8x8xbf16>, vector<2x8x8xbf16>, vector<2x8x8xbf16>, vector<2x8x8xbf16> -> vector<8x8x8xbf16>
    %33 = vector.extract_strided_slice %27 {offsets = [0, 0, 32], sizes = [2, 8, 8], strides = [1, 1, 1]} : vector<2x8x96xbf16> to vector<2x8x8xbf16>
    %34 = vector.extract_strided_slice %27 {offsets = [0, 0, 40], sizes = [2, 8, 8], strides = [1, 1, 1]} : vector<2x8x96xbf16> to vector<2x8x8xbf16>
    %35 = vector.extract_strided_slice %27 {offsets = [0, 0, 48], sizes = [2, 8, 8], strides = [1, 1, 1]} : vector<2x8x96xbf16> to vector<2x8x8xbf16>
    %36 = vector.extract_strided_slice %27 {offsets = [0, 0, 56], sizes = [2, 8, 8], strides = [1, 1, 1]} : vector<2x8x96xbf16> to vector<2x8x8xbf16>
    %37 = tpu.concatenate %33, %34, %35, %36 in 0 : vector<2x8x8xbf16>, vector<2x8x8xbf16>, vector<2x8x8xbf16>, vector<2x8x8xbf16> -> vector<8x8x8xbf16>
    %38 = vector.extract_strided_slice %27 {offsets = [0, 0, 64], sizes = [2, 8, 8], strides = [1, 1, 1]} : vector<2x8x96xbf16> to vector<2x8x8xbf16>
    %39 = vector.extract_strided_slice %27 {offsets = [0, 0, 72], sizes = [2, 8, 8], strides = [1, 1, 1]} : vector<2x8x96xbf16> to vector<2x8x8xbf16>
    %40 = vector.extract_strided_slice %27 {offsets = [0, 0, 80], sizes = [2, 8, 8], strides = [1, 1, 1]} : vector<2x8x96xbf16> to vector<2x8x8xbf16>
    %41 = vector.extract_strided_slice %27 {offsets = [0, 0, 88], sizes = [2, 8, 8], strides = [1, 1, 1]} : vector<2x8x96xbf16> to vector<2x8x8xbf16>
    %42 = tpu.concatenate %38, %39, %40, %41 in 0 : vector<2x8x8xbf16>, vector<2x8x8xbf16>, vector<2x8x8xbf16>, vector<2x8x8xbf16> -> vector<8x8x8xbf16>
    "tpu.trace_start"() <{level = 10 : i32, message = "bqd,bkd->bqk"}> : () -> ()
    %cst_22 = arith.constant dense<0.000000e+00> : vector<8x8x8xf32>
    %43 = tpu.matmul %32, %37, %cst_22 {dimension_numbers = #tpu.dot_dimension_numbers<[2], [2], [1], [1], [0, 0, 0, 1, 1, 1], [0], [0]>} : vector<8x8x8xbf16>, vector<8x8x8xbf16>, vector<8x8x8xf32> -> vector<8x8x8xf32>
    "tpu.trace_stop"() : () -> ()
    %44 = tpu.iota {dimensions = array<i32: 0>} : vector<8x8xi32>
    %45 = tpu.iota {dimensions = array<i32: 1>} : vector<8x8xi32>
    %46 = arith.cmpi sle, %45, %44 : vector<8x8xi32>
    %cst_23 = arith.constant -1.000000e+30 : f32
    %47 = vector.shape_cast %46 : vector<8x8xi1> to vector<1x8x8xi1>
    %48 = vector.broadcast %47 : vector<1x8x8xi1> to vector<8x8x8xi1>
    %49 = vector.broadcast %cst_23 : f32 to vector<8x8x8xf32>
    %50 = arith.select %48, %43, %49 : vector<8x8x8xi1>, vector<8x8x8xf32>
    %cst_24 = arith.constant dense<0xFF800000> : vector<8x8xf32>
    %51 = vector.multi_reduction <maximumf>, %50, %cst_24 [2] : vector<8x8x8xf32> to vector<8x8xf32>
    %52 = vector.shape_cast %51 : vector<8x8xf32> to vector<8x8x1xf32>
    %53 = vector.broadcast %52 : vector<8x8x1xf32> to vector<8x8x8xf32>
    %54 = arith.subf %50, %53 : vector<8x8x8xf32>
    %55 = math.exp %54 : vector<8x8x8xf32>
    %cst_25 = arith.constant dense<0.000000e+00> : vector<8x8xf32>
    %56 = vector.multi_reduction <add>, %55, %cst_25 [2] : vector<8x8x8xf32> to vector<8x8xf32>
    %57 = vector.shape_cast %56 : vector<8x8xf32> to vector<8x8x1xf32>
    %58 = tpu.reciprocal %57 {approx = true} : vector<8x8x1xf32> -> vector<8x8x1xf32>
    %59 = vector.broadcast %58 : vector<8x8x1xf32> to vector<8x8x8xf32>
    %60 = arith.mulf %55, %59 : vector<8x8x8xf32>
    %61 = arith.truncf %60 : vector<8x8x8xf32> to vector<8x8x8xbf16>
    "tpu.trace_start"() <{level = 10 : i32, message = "bqk,bkd->bqd"}> : () -> ()
    %cst_26 = arith.constant dense<0.000000e+00> : vector<8x8x8xf32>
    %62 = tpu.matmul %61, %42, %cst_26 {dimension_numbers = #tpu.dot_dimension_numbers<[2], [1], [1], [2], [0, 0, 0, 1, 1, 2], [0], [0]>} : vector<8x8x8xbf16>, vector<8x8x8xbf16>, vector<8x8x8xf32> -> vector<8x8x8xf32>
    "tpu.trace_stop"() : () -> ()
    %63 = vector.extract_strided_slice %62 {offsets = [0, 0, 0], sizes = [2, 8, 8], strides = [1, 1, 1]} : vector<8x8x8xf32> to vector<2x8x8xf32>
    %64 = vector.shape_cast %63 : vector<2x8x8xf32> to vector<16x8xf32>
    %65 = arith.truncf %64 : vector<16x8xf32> to vector<16x8xbf16>
    %c0_27 = arith.constant 0 : index
    %c0_28 = arith.constant 0 : index
    %c0_29 = arith.constant 0 : index
    %66 = vector.load %arg4[%c0_27, %c0_28, %c0_29] : memref<1x32x32xbf16, #tpu.memory_space<vmem>>, vector<1x8x32xbf16>
    %67 = vector.shape_cast %66 : vector<1x8x32xbf16> to vector<8x32xbf16>
    %cst_30 = arith.constant dense<0.000000e+00> : vector<16x32xf32>
    %68 = tpu.matmul %65, %67, %cst_30 {dimension_numbers = #tpu.dot_dimension_numbers<[1], [0], [0], [1], [0, 0, 1, 1], [], []>} : vector<16x8xbf16>, vector<8x32xbf16>, vector<16x32xf32> -> vector<16x32xf32>
    %69 = vector.extract_strided_slice %62 {offsets = [2, 0, 0], sizes = [2, 8, 8], strides = [1, 1, 1]} : vector<8x8x8xf32> to vector<2x8x8xf32>
    %70 = vector.shape_cast %69 : vector<2x8x8xf32> to vector<16x8xf32>
    %71 = arith.truncf %70 : vector<16x8xf32> to vector<16x8xbf16>
    %c0_31 = arith.constant 0 : index
    %c8 = arith.constant 8 : index
    %c0_32 = arith.constant 0 : index
    %72 = vector.load %arg4[%c0_31, %c8, %c0_32] : memref<1x32x32xbf16, #tpu.memory_space<vmem>>, vector<1x8x32xbf16>
    %73 = vector.shape_cast %72 : vector<1x8x32xbf16> to vector<8x32xbf16>
    %cst_33 = arith.constant dense<0.000000e+00> : vector<16x32xf32>
    %74 = tpu.matmul %71, %73, %cst_33 {dimension_numbers = #tpu.dot_dimension_numbers<[1], [0], [0], [1], [0, 0, 1, 1], [], []>} : vector<16x8xbf16>, vector<8x32xbf16>, vector<16x32xf32> -> vector<16x32xf32>
    %75 = arith.addf %68, %74 : vector<16x32xf32>
    %76 = vector.extract_strided_slice %62 {offsets = [4, 0, 0], sizes = [2, 8, 8], strides = [1, 1, 1]} : vector<8x8x8xf32> to vector<2x8x8xf32>
    %77 = vector.shape_cast %76 : vector<2x8x8xf32> to vector<16x8xf32>
    %78 = arith.truncf %77 : vector<16x8xf32> to vector<16x8xbf16>
    %c0_34 = arith.constant 0 : index
    %c16 = arith.constant 16 : index
    %c0_35 = arith.constant 0 : index
    %79 = vector.load %arg4[%c0_34, %c16, %c0_35] : memref<1x32x32xbf16, #tpu.memory_space<vmem>>, vector<1x8x32xbf16>
    %80 = vector.shape_cast %79 : vector<1x8x32xbf16> to vector<8x32xbf16>
    %cst_36 = arith.constant dense<0.000000e+00> : vector<16x32xf32>
    %81 = tpu.matmul %78, %80, %cst_36 {dimension_numbers = #tpu.dot_dimension_numbers<[1], [0], [0], [1], [0, 0, 1, 1], [], []>} : vector<16x8xbf16>, vector<8x32xbf16>, vector<16x32xf32> -> vector<16x32xf32>
    %82 = arith.addf %75, %81 : vector<16x32xf32>
    %83 = vector.extract_strided_slice %62 {offsets = [6, 0, 0], sizes = [2, 8, 8], strides = [1, 1, 1]} : vector<8x8x8xf32> to vector<2x8x8xf32>
    %84 = vector.shape_cast %83 : vector<2x8x8xf32> to vector<16x8xf32>
    %85 = arith.truncf %84 : vector<16x8xf32> to vector<16x8xbf16>
    %c0_37 = arith.constant 0 : index
    %c24 = arith.constant 24 : index
    %c0_38 = arith.constant 0 : index
    %86 = vector.load %arg4[%c0_37, %c24, %c0_38] : memref<1x32x32xbf16, #tpu.memory_space<vmem>>, vector<1x8x32xbf16>
    %87 = vector.shape_cast %86 : vector<1x8x32xbf16> to vector<8x32xbf16>
    %cst_39 = arith.constant dense<0.000000e+00> : vector<16x32xf32>
    %88 = tpu.matmul %85, %87, %cst_39 {dimension_numbers = #tpu.dot_dimension_numbers<[1], [0], [0], [1], [0, 0, 1, 1], [], []>} : vector<16x8xbf16>, vector<8x32xbf16>, vector<16x32xf32> -> vector<16x32xf32>
    %89 = arith.addf %82, %88 : vector<16x32xf32>
    %90 = vector.broadcast %7 : vector<1x32xf32> to vector<16x32xf32>
    %91 = arith.addf %89, %90 : vector<16x32xf32>
    %92 = arith.addf %3, %91 : vector<16x32xf32>
    %cst_40 = arith.constant dense<0.000000e+00> : vector<16xf32>
    %93 = vector.multi_reduction <add>, %92, %cst_40 [1] : vector<16x32xf32> to vector<16xf32>
    %94 = vector.shape_cast %93 : vector<16xf32> to vector<16x1xf32>
    %cst_41 = arith.constant 3.200000e+01 : f32
    %95 = vector.broadcast %cst_41 : f32 to vector<16x1xf32>
    %96 = arith.divf %94, %95 : vector<16x1xf32>
    %97 = vector.broadcast %96 : vector<16x1xf32> to vector<16x32xf32>
    %98 = arith.subf %92, %97 : vector<16x32xf32>
    %99 = arith.mulf %98, %98 : vector<16x32xf32>
    %cst_42 = arith.constant dense<0.000000e+00> : vector<16xf32>
    %100 = vector.multi_reduction <add>, %99, %cst_42 [1] : vector<16x32xf32> to vector<16xf32>
    %101 = vector.shape_cast %100 : vector<16xf32> to vector<16x1xf32>
    %cst_43 = arith.constant 3.200000e+01 : f32
    %102 = vector.broadcast %cst_43 : f32 to vector<16x1xf32>
    %103 = arith.divf %101, %102 : vector<16x1xf32>
    %104 = vector.broadcast %96 : vector<16x1xf32> to vector<16x32xf32>
    %105 = arith.subf %92, %104 : vector<16x32xf32>
    %cst_44 = arith.constant 9.99999974E-6 : f32
    %106 = vector.broadcast %cst_44 : f32 to vector<16x1xf32>
    %107 = arith.addf %103, %106 : vector<16x1xf32>
    %108 = math.rsqrt %107 : vector<16x1xf32>
    %109 = vector.broadcast %108 : vector<16x1xf32> to vector<16x32xf32>
    %110 = arith.mulf %105, %109 : vector<16x32xf32>
    %111 = vector.broadcast %13 : vector<1x32xf32> to vector<16x32xf32>
    %112 = arith.mulf %110, %111 : vector<16x32xf32>
    %113 = vector.broadcast %15 : vector<1x32xf32> to vector<16x32xf32>
    %114 = arith.addf %112, %113 : vector<16x32xf32>
    %115 = arith.truncf %114 : vector<16x32xf32> to vector<16x32xbf16>
    %c0_45 = arith.constant 0 : index
    %c0_46 = arith.constant 0 : index
    %c0_47 = arith.constant 0 : index
    %116 = vector.load %arg5[%c0_45, %c0_46, %c0_47] : memref<1x32x64xbf16, #tpu.memory_space<vmem>>, vector<1x32x64xbf16>
    %117 = vector.shape_cast %116 : vector<1x32x64xbf16> to vector<32x64xbf16>
    %cst_48 = arith.constant dense<0.000000e+00> : vector<16x64xf32>
    %118 = tpu.matmul %115, %117, %cst_48 {dimension_numbers = #tpu.dot_dimension_numbers<[1], [0], [0], [1], [0, 0, 1, 1], [], []>} : vector<16x32xbf16>, vector<32x64xbf16>, vector<16x64xf32> -> vector<16x64xf32>
    %119 = vector.broadcast %9 : vector<1x64xf32> to vector<16x64xf32>
    %120 = arith.addf %118, %119 : vector<16x64xf32>
    %cst_49 = arith.constant 0.000000e+00 : f32
    %121 = vector.broadcast %cst_49 : f32 to vector<16x64xf32>
    %122 = arith.maximumf %120, %121 : vector<16x64xf32>
    %123 = arith.truncf %122 : vector<16x64xf32> to vector<16x64xbf16>
    %c0_50 = arith.constant 0 : index
    %c0_51 = arith.constant 0 : index
    %c0_52 = arith.constant 0 : index
    %124 = vector.load %arg6[%c0_50, %c0_51, %c0_52] : memref<1x64x32xbf16, #tpu.memory_space<vmem>>, vector<1x64x32xbf16>
    %125 = vector.shape_cast %124 : vector<1x64x32xbf16> to vector<64x32xbf16>
    %cst_53 = arith.constant dense<0.000000e+00> : vector<16x32xf32>
    %126 = tpu.matmul %123, %125, %cst_53 {dimension_numbers = #tpu.dot_dimension_numbers<[1], [0], [0], [1], [0, 0, 1, 1], [], []>} : vector<16x64xbf16>, vector<64x32xbf16>, vector<16x32xf32> -> vector<16x32xf32>
    %127 = vector.broadcast %11 : vector<1x32xf32> to vector<16x32xf32>
    %128 = arith.addf %126, %127 : vector<16x32xf32>
    %129 = arith.addf %114, %128 : vector<16x32xf32>
    %cst_54 = arith.constant dense<0.000000e+00> : vector<16xf32>
    %130 = vector.multi_reduction <add>, %129, %cst_54 [1] : vector<16x32xf32> to vector<16xf32>
    %131 = vector.shape_cast %130 : vector<16xf32> to vector<16x1xf32>
    %cst_55 = arith.constant 3.200000e+01 : f32
    %132 = vector.broadcast %cst_55 : f32 to vector<16x1xf32>
    %133 = arith.divf %131, %132 : vector<16x1xf32>
    %134 = vector.broadcast %133 : vector<16x1xf32> to vector<16x32xf32>
    %135 = arith.subf %129, %134 : vector<16x32xf32>
    %136 = arith.mulf %135, %135 : vector<16x32xf32>
    %cst_56 = arith.constant dense<0.000000e+00> : vector<16xf32>
    %137 = vector.multi_reduction <add>, %136, %cst_56 [1] : vector<16x32xf32> to vector<16xf32>
    %138 = vector.shape_cast %137 : vector<16xf32> to vector<16x1xf32>
    %cst_57 = arith.constant 3.200000e+01 : f32
    %139 = vector.broadcast %cst_57 : f32 to vector<16x1xf32>
    %140 = arith.divf %138, %139 : vector<16x1xf32>
    %141 = vector.broadcast %133 : vector<16x1xf32> to vector<16x32xf32>
    %142 = arith.subf %129, %141 : vector<16x32xf32>
    %cst_58 = arith.constant 9.99999974E-6 : f32
    %143 = vector.broadcast %cst_58 : f32 to vector<16x1xf32>
    %144 = arith.addf %140, %143 : vector<16x1xf32>
    %145 = math.rsqrt %144 : vector<16x1xf32>
    %146 = vector.broadcast %145 : vector<16x1xf32> to vector<16x32xf32>
    %147 = arith.mulf %142, %146 : vector<16x32xf32>
    %148 = vector.broadcast %17 : vector<1x32xf32> to vector<16x32xf32>
    %149 = arith.mulf %147, %148 : vector<16x32xf32>
    %150 = vector.broadcast %19 : vector<1x32xf32> to vector<16x32xf32>
    %151 = arith.addf %149, %150 : vector<16x32xf32>
    %c1_i32 = arith.constant 1 : i32
    %152 = arith.cmpi slt, %arg1, %c1_i32 : i32
    %153 = arith.extui %152 : i1 to i32
    %c0_i32_59 = arith.constant 0 : i32
    %154 = arith.cmpi ne, %153, %c0_i32_59 : i32
    scf.if %154 {
      %c0_62 = arith.constant 0 : index
      %c0_63 = arith.constant 0 : index
      %158 = vector.load %arg9[%c0_62, %c0_63] : memref<16x32xf32, #tpu.memory_space<vmem>>, vector<16x32xf32>
      tpu.vector_store %arg9[%c0_62, %c0_63], %151 {strides = array<i32>} : memref<16x32xf32, #tpu.memory_space<vmem>>, vector<16x32xf32>,
    } else {
    }
    %c1_i32_60 = arith.constant 1 : i32
    %155 = arith.cmpi eq, %arg1, %c1_i32_60 : i32
    %156 = arith.extui %155 : i1 to i32
    %c0_i32_61 = arith.constant 0 : i32
    %157 = arith.cmpi ne, %156, %c0_i32_61 : i32
    scf.if %157 {
      %c0_62 = arith.constant 0 : index
      %c0_63 = arith.constant 0 : index
      %158 = vector.load %arg8[%c0_62, %c0_63] : memref<16x32xf32, #tpu.memory_space<vmem>>, vector<16x32xf32>
      tpu.vector_store %arg8[%c0_62, %c0_63], %151 {strides = array<i32>} : memref<16x32xf32, #tpu.memory_space<vmem>>, vector<16x32xf32>,
    } else {
    }
    return
  }
  func.func @transform_0(%arg0: i32, %arg1: i32) -> (i32, i32) {
    %c0_i32 = arith.constant 0 : i32
    %c0_i32_0 = arith.constant 0 : i32
    return %arg0, %c0_i32 : i32, i32
  }
  func.func @transform_1(%arg0: i32, %arg1: i32) -> (i32, i32, i32) {
    %c0_i32 = arith.constant 0 : i32
    %c0_i32_0 = arith.constant 0 : i32
    %c0_i32_1 = arith.constant 0 : i32
    return %arg1, %c0_i32, %c0_i32_0 : i32, i32, i32
  }
  func.func @transform_2(%arg0: i32, %arg1: i32) -> (i32, i32, i32) {
    %c0_i32 = arith.constant 0 : i32
    %c0_i32_0 = arith.constant 0 : i32
    %c0_i32_1 = arith.constant 0 : i32
    return %arg1, %c0_i32, %c0_i32_0 : i32, i32, i32
  }
  func.func @transform_3(%arg0: i32, %arg1: i32) -> (i32, i32, i32) {
    %c0_i32 = arith.constant 0 : i32
    %c0_i32_0 = arith.constant 0 : i32
    %c0_i32_1 = arith.constant 0 : i32
    return %arg1, %c0_i32, %c0_i32_0 : i32, i32, i32
  }
  func.func @transform_4(%arg0: i32, %arg1: i32) -> (i32, i32, i32) {
    %c0_i32 = arith.constant 0 : i32
    %c0_i32_0 = arith.constant 0 : i32
    %c0_i32_1 = arith.constant 0 : i32
    return %arg1, %c0_i32, %c0_i32_0 : i32, i32, i32
  }
  func.func @transform_5(%arg0: i32, %arg1: i32) -> (i32, i32, i32) {
    %c0_i32 = arith.constant 0 : i32
    %c0_i32_0 = arith.constant 0 : i32
    %c0_i32_1 = arith.constant 0 : i32
    return %arg1, %c0_i32, %c0_i32_0 : i32, i32, i32
  }
  func.func @transform_6(%arg0: i32, %arg1: i32) -> (i32, i32) {
    %c0_i32 = arith.constant 0 : i32
    %c0_i32_0 = arith.constant 0 : i32
    return %arg0, %c0_i32 : i32, i32
  }
}

</mosaic_0001>

<bundles_post_ra>
// kernel: tpu_custom_call.1
= control target key start
LH: loop header
LB: loop body
LE: loop exit
PB: predicated region body
PF: predicated region fallthrough
CT: control target
= control target key end

     0   :  { %11 = vsyncpa [#allocation4], 0  ;;  %s2108_s0 = inlined_call_operand.hbm [shape: f32[16,32], index: 0, kind: input, shape index: {}]   ;;  %s2109_s1 = inlined_call_operand.vmem [shape: bf16[2,32,96], index: 1, kind: input, shape index: {}]   ;;  %s2110_s2 = inlined_call_operand.vmem [shape: bf16[2,32,32], index: 2, kind: input, shape index: {}]   ;;  %s2111_s3 = inlined_call_operand.vmem [shape: bf16[2,32,64], index: 3, kind: input, shape index: {}]   ;;  %s2112_s4 = inlined_call_operand.vmem [shape: bf16[2,64,32], index: 4, kind: input, shape index: {}]   ;;  %s2113_s5 = inlined_call_operand.hbm [shape: f32[2,8,128], index: 5, kind: input, shape index: {}]   ;;  %s2114_s6 = inlined_call_operand.hbm [shape: f32[16,32], index: 6, kind: output, shape index: {}]  }
   0x1   :  { %12 = vsyncpa [#allocation7], 0 }
   0x2   :  { %14 = vsyncpa [#allocation7 + $0x1], 0 }
   0x3   :  { %15 = vsyncpa [#allocation5], 0  ;;  %s1781_s21 = smov 0   ;;  %s1783_s22 = smov 0  }
   0x4   :  { %s1785_s23 = smov 0   ;;  %s1787_s24 = smov 0  }
   0x5   :  { %s1789_s25 = smov 0   ;;  %s1791_s26 = smov 0  }
   0x6 LB: > { %s1362_s27 = sadd.s32 4294967295, %s1732_s26   ;;  %p1363_p0 = scmp.ge.s32.totalorder %s1732_s26, 1  ;;  %s1732_s26 = sphi %s1791_s26, %s21_s26   ;;  %s1728_s25 = sphi %s1789_s25, %s2125_s25   ;;  %s1724_s24 = sphi %s1787_s24, %s2124_s24   ;;  %s1720_s23 = sphi %s1785_s23, %s2123_s23   ;;  %s1716_s22 = sphi %s1783_s22, %s2122_s22   ;;  %s1712_s21 = sphi %s1781_s21, %s2121_s21  }
   0x7   : > { %p1815_p1 = scmp.eq.s32.totalorder %s1362_s27, 0  ;;  %p220_p2 = scmp.lt.s32.totalorder %s1732_s26, 3 }
   0x8   : > { %s234_s7 = sshll.u32 %s2108_s0, 4  ;;  %s1734_s9 = smov [#allocation3]   ;;  %s235_s7 = int_to_ptr.hbm [resolvable:$true] %s234_s7 }
   0x9   : > { %p1823_p3 = pnand %p1363_p0, %p220_p2  ;;  %s236_s10 = sshll.u32 %s1734_s9, 4  ;;  %s237_s10 = int_to_ptr.vmem [resolvable:$true] %s236_s10 }
   0xa   : > { %s1735_s11 = smov 128   ;;  %s1736_s12 = smov 8  }
   0xb   : > { %p1463_p4 = pneg %p1823_p3  ;;  %s30_s13 = sadd.s32 1, %s1728_s25 }
   0xc   : > { %p31_p6 = scmp.ge.s32.totalorder %s30_s13, 2  ;;  %p177_p7 = scmp.ne.s32.totalorder %s1720_s23, %s1716_s22 }
   0xd   : > { %p1464_p5 = pnand %p1463_p4, %p1815_p1  ;;  %p178_p8 = scmp.eq.s32.totalorder %s1732_s26, 0 }
   0xe   : > { %s2127_s13 = smov (%p31_p6, %s30_s13), 0  ;;  %s170_s14 = sadd.s32 1, %s1720_s23 }
   0xf   : > { %1466 = dma.hbm_to_vmem [thread:$0]  (!%p1464_p5), %s235_s7, 256, %s237_s10, [#allocation4], %s1735_s11, %s1735_s11, %s1736_s12  }
  0x10   : > { %p183_p9 = scmp.ne.s32.totalorder %s1716_s22, %s1712_s21  ;;  %s167_s15 = ssub.s32 %s1728_s25, %s2127_s13 }
  0x11   : > { %p1842_p10 = por %p178_p8, %p177_p7  ;;  %p168_p11 = scmp.eq.s32.totalorder %s167_s15, 0 }
  0x12   : > { %p1848_p12 = por %p1815_p1, %p183_p9  ;;  %s282_s18 = sand.u32 1, %s1720_s23  }
  0x13   : > { %s1367_s19 = sshll.u32 %s1728_s25, 3  ;;  %p1472_p13 = scmp.lt.s32.totalorder %s1732_s26, 2 }
  0x14   : > { %s1855_s20 = scalar_select %p168_p11, %s1720_s23, %s170_s14  }
  0x15   : > { %s1366_s29 = sshll.u32 %s282_s18, 3  ;;  %s290_s7 = scalar_lea.hbm %s2113_s5, %s1367_s19 }
  0x16   : > { %s292_s9 = sshll.u32 %s290_s7, 4  ;;  %s286_s10 = scalar_lea.vmem [#allocation6], %s1366_s29  ;;  %s293_s9 = int_to_ptr.hbm [resolvable:$true] %s292_s9 }
  0x17   : > { %s294_s11 = sshll.u32 %s286_s10, 4  ;;  %p1468_p0 = pnand %p1472_p13, %p1842_p10  ;;  %s295_s11 = int_to_ptr.vmem [resolvable:$true] %s294_s11 }
  0x18   : > { %s283_s12 = scalar_lea.sflag [#allocation7], %s282_s18  ;;  %303 = sbr.rel (%p1823_p3) target bundleno = 1998 (0x7ce), region = 44 }
  0x19   : > { %1470 = dma.hbm_to_vmem [thread:$0]  (!%p1468_p0), %s293_s9, 128, %s295_s11, %s283_s12  }
  0x1d   : > { %1699 = dma.done.wait (%p1815_p1), [#allocation4], 256  }
  0x1e   : > { %1701 = vsyncadd (%p1815_p1), [#allocation4], 4294967040  ;;  %s310_s14 = sand.u32 1, %s1716_s22  }
  0x1f   : > { %s1370_s15 = sshll.u32 %s310_s14, 3  ;;  %s311_s19 = scalar_lea.sflag [#allocation7], %s310_s14 }
  0x20   : > { %s1870_s29 = scalar_lea.vmem [#allocation6], %s1370_s15 }
  0x21   : > { %1703 = dma.done.wait (%p1848_p12), %s311_s19, 128  }
  0x22   : > { %1705 = vsyncadd (%p1848_p12), %s311_s19, 4294967168  ;;  %p360_p2 = scmp.lt.s32.totalorder %s1724_s24, 1  ;;  %p1379_p1 = scmp.ne.s32.totalorder %s1724_s24, 0 }
  0x24   : > { %s361_s8 = scalar_select %p360_p2, %s1724_s24, 1 }
  0x25   : > { %385 = sbr.rel (%p1379_p1) target bundleno = 45 (0x2d), region = 56 }
  0x26   : > { %s1441_s16 = sshll.u32 %s361_s8, 4  ;;  %s1444_s18 = sshll.u32 %s361_s8, 5 }
  0x27   : > { %s364_s21 = scalar_lea.vmem %s2109_s1, %s1441_s16  ;;  %s1884_s10 = scalar_lea.vmem %s2110_s2, %s1441_s16 }
  0x28   : > { %s1889_s17 = scalar_lea.vmem %s2111_s3, %s1441_s16  ;;  %s1894_s19 = scalar_lea.vmem %s2112_s4, %s1444_s18 }
  0x2a   : > { %v386_v0 = vld [vmem:[#allocation3] sm:$0xff]  ;;  %vm388_vm0 = vcmask 261120   ;;  %v387_v1 = vld [vmem:[#allocation3 + $0x8] sm:$0xff] }
  0x2b   : > { %389 = vst.msk [vmem:[#allocation2] sm:$0xff] %vm388_vm0, %v386_v0 }
  0x2c   : > { %390 = vst.msk [vmem:[#allocation2 + $0x8] sm:$0xff] %vm388_vm0, %v387_v1 }
  0x2d PF: > { %v1446_v2 = vld [vmem:[%s364_s21 + $0x8] sm:$0xff]  ;;  %v1445_v3 = vld [vmem:[%s364_s21] sm:$0xff]  ;;  %vm419_vm1 = vcmask 261120   ;;  %s1737_s8 = smov 112   ;;  %s1738_s16 = smov 120   ;;  %vm457_vm2 = vcmask 64512   ;;  %v638_v40 = vlaneseq }
  0x2e   : > { %429 = vmatpush.bf16.msra.mxu0 %v1446_v2  ;;  %v1536_v7 = vld [vmem:[%s1870_s29] ss:$0 sm:$0xff]  ;;  %s1739_s18 = smov 104   ;;  %s1740_s28 = smov 96   ;;  %vm754_vm4 = vcmask 1043456   ;;  %vm1143_vm12 = vcmask 523264  }
  0x2f   : > { %s1741_s30 = smov 64   ;;  %v639_v44 = vshrl.u32 %v638_v40, 7  ;;  %v641_v45 = vand.u32 127, %v638_v40  ;;  %p1435_p3 = scmp.ge.s32.totalorder %s1724_s24, 1 }
  0x31   : > { %vm1947_vm3 = vcmp.le.s32.totalorder %v641_v45, %v639_v44 }
  0x32   : > { %v1897_v4 = vld [vmem:[#allocation2] sm:$0xff]  ;;  %430 = vmatpush.bf16.msra.mxu0 %v1445_v3 }
  0x33   : > { %v1899_v5 = vld [vmem:[#allocation2 + $0x8] sm:$0xff] }
  0x34   : > { %v401_v6 = vpack.c.bf16 %v1899_v5, %v1897_v4 }
  0x36   : > { %1388 = vmatmul.msk.bf16.vlgmr.msra.gmra.mxu0 %vm419_vm1, %v401_v6 }
  0xb3   : > { %v432_v8 = vpop.f32.mrf.mxu0 }
  0xb4   : > { %v433_v9 = vadd.f32 %v1536_v7, %v432_v8 }
  0xb6   : > { %v437_v10 = vpack.c.bf16 %v433_v9, %v433_v9 }
  0xb8   : > { %445 = vrot.lane.b32.xlu2 %v437_v10, %s1737_s8  ;;  %441 = vrot.lane.b32.xlu0 %v437_v10, %s1738_s16  ;;  %v453_v14 = vunpack.c.l.b16 %v437_v10 }
  0xba   : > { %v1905_v16 = vpack.c.b16 %v453_v14, %v453_v14 }
  0xbb   : > { %v434_v11 = vpop.f32.mrf.mxu0 }
  0xbc   : > { %v435_v12 = vadd.f32 %v1536_v7, %v434_v11 }
  0xbe   : > { %v438_v13 = vpack.c.bf16 %v435_v12, %v435_v12 }
  0xc0   : > { %443 = vrot.lane.b32.xlu1 %v438_v13, %s1738_s16  ;;  %451 = vrot.lane.b32.xlu2 %v438_v13, %s1739_s18  ;;  %v477_v15 = vunpack.c.l.b16 %v438_v13 }
  0xc1   : > { %447 = vrot.lane.b32.xlu0 %v438_v13, %s1737_s8 }
  0xc2   : > { %v1907_v17 = vpack.c.b16 %v477_v15, %v477_v15 }
  0xc8   : > { %449 = vrot.lane.b32.xlu1 %v437_v10, %s1739_s18  ;;  %455 = vrot.lane.b32.xlu2 %v1905_v16, %s1740_s28 }
  0xc9   : > { %479 = vrot.lane.b32.xlu0 %v1907_v17, %s1740_s28 }
 0x112   : > { %v1913_v18 = vpop.permute.xlu2 %445 }
 0x113   : > { %v546_v32 = vunpack.c.l.b16 %v1913_v18 }
 0x115   : > { %v1935_v39 = vpack.c.b16 %v546_v32, %v546_v32 }
 0x11a   : > { %v1915_v19 = vpop.permute.xlu2 %451 }
 0x11b   : > { %v615_v31 = vunpack.c.l.b16 %v1915_v19 }
 0x11d   : > { %v1931_v37 = vpack.c.b16 %v615_v31, %v615_v31 }
 0x122   : > { %v456_v20 = vpop.permute.xlu2 %455 }
 0x123   : > { %v462_v21 = vsel %vm457_vm2, %v456_v20, 0 }
 0x124   : > { %471 = vmatpush.bf16.xpose.msra.mxu1 %v462_v21 }
 0x12a   : > { %v442_v22 = vpop.permute.xlu0 %441 }
 0x12b   : > { %v500_v23 = vunpack.c.l.b16 %v442_v22  ;;  %1389 = vmatmul.msk.bf16.vlgmr.msra.gmra.mxu1 %vm457_vm2, %v437_v10 }
 0x12d   : > { %v501_v24 = vpack.c.b16 %v500_v23, %v500_v23 }
 0x12f   : > { %502 = vrot.lane.b32.xlu1 %v501_v24, %s1740_s28 }
 0x132   : > { %v444_v25 = vpop.permute.xlu1 %443 }
 0x133   : > { %v523_v26 = vunpack.c.l.b16 %v444_v25  ;;  %v448_v27 = vpop.permute.xlu0 %447 }
 0x134   : > { %v569_v28 = vunpack.c.l.b16 %v448_v27 }
 0x135   : > { %v1920_v29 = vpack.c.b16 %v523_v26, %v523_v26 }
 0x136   : > { %v1922_v30 = vpack.c.b16 %v569_v28, %v569_v28 }
 0x137   : > { %525 = vrot.lane.b32.xlu1 %v1920_v29, %s1740_s28 }
 0x138   : > { %571 = vrot.lane.b32.xlu0 %v1922_v30, %s1740_s28 }
 0x13a   : > { %v450_v33 = vpop.permute.xlu1 %449 }
 0x13b   : > { %v592_v34 = vunpack.c.l.b16 %v450_v33  ;;  %v480_v35 = vpop.permute.xlu0 %479 }
 0x13c   : > { %v485_v36 = vsel %vm457_vm2, %v480_v35, 0 }
 0x13d   : > { %v1933_v38 = vpack.c.b16 %v592_v34, %v592_v34  ;;  %494 = vmatpush.bf16.xpose.msra.mxu2 %v485_v36 }
 0x13f   : > { %617 = vrot.lane.b32.xlu1 %v1931_v37, %s1740_s28  ;;  %594 = vrot.lane.b32.xlu2 %v1933_v38, %s1740_s28 }
 0x140   : > { %548 = vrot.lane.b32.xlu0 %v1935_v39, %s1740_s28 }
 0x144   : > { %1390 = vmatmul.msk.bf16.vlgmr.msra.gmra.mxu2 %vm457_vm2, %v438_v13 }
 0x147   : > { %792 = vrot.lane.b32.xlu1 %v501_v24, %s1741_s30 }
 0x199   : > { %v595_v41 = vpop.permute.xlu2 %594 }
 0x19a   : > { %v600_v46 = vsel %vm457_vm2, %v595_v41, 0 }
 0x1a1   : > { %v503_v42 = vpop.permute.xlu1 %502 }
 0x1a2   : > { %v508_v43 = vsel %vm457_vm2, %v503_v42, 0 }
 0x1a3   : > { %517 = vmatpush.bf16.xpose.msra.mxu3 %v508_v43 }
 0x1a8   : > { %v473_v48 = vpop.f32.mrf.mxu1 }
 0x1a9   : > { %v645_v49 = vsel %vm1947_vm3, %v473_v48, -1e+30  ;;  %v526_v50 = vpop.permute.xlu1 %525 }
 0x1aa   : > { %v572_v51 = vpop.permute.xlu0 %571  ;;  %1391 = vmatmul.msk.bf16.vlgmr.msra.gmra.mxu3 %vm457_vm2, %v442_v22  ;;  %v531_v52 = vsel %vm457_vm2, %v526_v50, 0  ;;  %v653_v53 = vsel %vm457_vm2, %v645_v49, -inf }
 0x1ab   : > { %609 = vmatpush.bf16.xpose.msrb.mxu3 %v600_v46  ;;  %540 = vmatpush.bf16.xpose.msrb.mxu0 %v531_v52  ;;  %v577_v54 = vsel %vm457_vm2, %v572_v51, 0 }
 0x1ac   : > { %654 = vmax.xlane.f32.xlu0 %v653_v53  ;;  %586 = vmatpush.bf16.xpose.msrb.mxu2 %v577_v54 }
 0x1b0   : > { %v475_v55 = vpop.f32.mrf.mxu1 }
 0x1b1   : > { %v618_v56 = vpop.permute.xlu1 %617 }
 0x1b2   : > { %v623_v57 = vsel %vm457_vm2, %v618_v56, 0  ;;  %v549_v58 = vpop.permute.xlu0 %548  ;;  %1392 = vmatmul.msk.bf16.vlgmr.msrb.gmra.mxu0 %vm457_vm2, %v444_v25 }
 0x1b3   : > { %1394 = vmatmul.msk.bf16.vlgmr.msrb.gmra.mxu2 %vm457_vm2, %v448_v27  ;;  %v554_v59 = vsel %vm457_vm2, %v549_v58, 0  ;;  %632 = vmatpush.bf16.xpose.msra.mxu0 %v623_v57 }
 0x1b4   : > { %563 = vmatpush.bf16.xpose.msrb.mxu1 %v554_v59 }
 0x1b9   : > { %v793_v60 = vpop.permute.xlu1 %792 }
 0x1ba   : > { %v798_v61 = vsel %vm754_vm4, %v793_v60, 0  ;;  %1395 = vmatmul.msk.bf16.vlgmr.msrb.gmra.mxu3 %vm457_vm2, %v450_v33 }
 0x1bb   : > { %1393 = vmatmul.msk.bf16.vlgmr.msrb.gmra.mxu1 %vm457_vm2, %v1913_v18  ;;  %807 = vmatpush.bf16.msra.mxu3 %v798_v61 }
 0x1c2   : > { %1396 = vmatmul.msk.bf16.vlgmr.msra.gmra.mxu0 %vm457_vm2, %v1915_v19 }
 0x1c7   : > { %v496_v62 = vpop.f32.mrf.mxu2 }
 0x1c8   : > { %v646_v63 = vsel %vm1947_vm3, %v496_v62, -1e+30 }
 0x1c9   : > { %v656_v0 = vsel %vm457_vm2, %v646_v63, -inf }
 0x1ca   : > { %657 = vmax.xlane.f32.xlu2 %v656_v0 }
 0x1cf   : > { %v498_v1 = vpop.f32.mrf.mxu2 }
 0x1e2   : > { %749 = vrot.lane.b32.xlu2 %v1905_v16, %s1741_s30 }
 0x21f   : > { %v655_v2 = vpop.xlane.xlu0 %654 }
 0x220   : > { %v677_v3 = vsub.f32 %v645_v49, %v655_v2 }
 0x222   : > { %v685_v6 = vmul.f32 1.442695, %v677_v3 }
 0x224   : > { %1544 = vpow2.f32 %v685_v6 }
 0x22a   : > { %v1545_v13 = vpop.eup %1544 }
 0x22b   : > { %v701_v19 = vsel %vm457_vm2, %v1545_v13, 0.0 }
 0x22d   : > { %v519_v7 = vpop.f32.mrf.mxu3 }
 0x22e   : > { %v647_v8 = vsel %vm1947_vm3, %v519_v7, -1e+30 }
 0x22f   : > { %v542_v9 = vpop.f32.mrf.mxu0  ;;  %v659_v10 = vsel %vm457_vm2, %v647_v8, -inf }
 0x230   : > { %v648_v11 = vsel %vm1947_vm3, %v542_v9, -1e+30  ;;  %660 = vmax.xlane.f32.xlu1 %v659_v10 }
 0x231   : > { %v662_v12 = vsel %vm457_vm2, %v648_v11, -inf }
 0x232   : > { %663 = vmax.xlane.f32.xlu2 %v662_v12 }
 0x235   : > { %v521_v14 = vpop.f32.mrf.mxu3 }
 0x236   : > { %v588_v15 = vpop.f32.mrf.mxu2 }
 0x237   : > { %v650_v16 = vsel %vm1947_vm3, %v588_v15, -1e+30  ;;  %v544_v18 = vpop.f32.mrf.mxu0 }
 0x238   : > { %v565_v20 = vpop.f32.mrf.mxu1  ;;  %702 = vadd.xlane.f32.xlu1 %v701_v19  ;;  %v668_v22 = vsel %vm457_vm2, %v650_v16, -inf }
 0x239   : > { %v649_v21 = vsel %vm1947_vm3, %v565_v20, -1e+30 }
 0x23a   : > { %669 = vmax.xlane.f32.xlu2 %v668_v22  ;;  %v665_v23 = vsel %vm457_vm2, %v649_v21, -inf }
 0x23b   : > { %666 = vmax.xlane.f32.xlu0 %v665_v23 }
 0x23d   : > { %v658_v24 = vpop.xlane.xlu2 %657  ;;  %v611_v25 = vpop.f32.mrf.mxu3 }
 0x23e   : > { %v590_v26 = vpop.f32.mrf.mxu2  ;;  %v651_v27 = vsel %vm1947_vm3, %v611_v25, -1e+30  ;;  %v678_v40 = vsub.f32 %v646_v63, %v658_v24 }
 0x23f   : > { %v634_v28 = vpop.f32.mrf.mxu0  ;;  %v671_v31 = vsel %vm457_vm2, %v651_v27, -inf }
 0x240   : > { %v567_v32 = vpop.f32.mrf.mxu1  ;;  %672 = vmax.xlane.f32.xlu1 %v671_v31  ;;  %v687_v41 = vmul.f32 1.442695, %v678_v40  ;;  %v652_v43 = vsel %vm1947_vm3, %v634_v28, -1e+30 }
 0x241   : > { %v674_v45 = vsel %vm457_vm2, %v652_v43, -inf }
 0x242   : > { %1546 = vpow2.f32 %v687_v41 }
 0x245   : > { %v750_v33 = vpop.permute.xlu2 %749  ;;  %v613_v34 = vpop.f32.mrf.mxu3 }
 0x246   : > { %v756_v35 = vsel %vm754_vm4, %v750_v33, 0 }
 0x247   : > { %765 = vmatpush.bf16.msra.mxu1 %v756_v35  ;;  %v636_v36 = vpop.f32.mrf.mxu0 }
 0x248   : > { %v1993_v42 = vpop.eup %1546 }
 0x249   : > { %v704_v44 = vsel %vm457_vm2, %v1993_v42, 0.0 }
 0x24f   : > { %771 = vrot.lane.b32.xlu0 %v1907_v17, %s1741_s30 }
 0x252   : > { %813 = vrot.lane.b32.xlu2 %v1920_v29, %s1741_s30 }
 0x279   : > { %705 = vadd.xlane.f32.xlu0 %v704_v44 }
 0x27b   : > { %675 = vmax.xlane.f32.xlu2 %v674_v45 }
 0x2a3   : > { %v661_v46 = vpop.xlane.xlu1 %660 }
 0x2a4   : > { %v679_v17 = vsub.f32 %v647_v8, %v661_v46 }
 0x2a5   : > { %v664_v48 = vpop.xlane.xlu2 %663 }
 0x2a6   : > { %v689_v49 = vmul.f32 1.442695, %v679_v17  ;;  %v680_v29 = vsub.f32 %v648_v11, %v664_v48 }
 0x2a8   : > { %1548 = vpow2.f32 %v689_v49  ;;  %v691_v50 = vmul.f32 1.442695, %v680_v29 }
 0x2aa   : > { %1550 = vpow2.f32 %v691_v50 }
 0x2ab   : > { %v703_v51 = vpop.xlane.xlu1 %702 }
 0x2ac   : > { %1552 = vrcp.f32 %v703_v51 }
 0x2ad   : > { %v670_v52 = vpop.xlane.xlu2 %669 }
 0x2ae   : > { %v1549_v47 = vpop.eup %1548  ;;  %v667_v53 = vpop.xlane.xlu0 %666  ;;  %v682_v54 = vsub.f32 %v650_v16, %v670_v52 }
 0x2af   : > { %v681_v55 = vsub.f32 %v649_v21, %v667_v53  ;;  %v707_v56 = vsel %vm457_vm2, %v1549_v47, 0.0 }
 0x2b0   : > { %v1551_v57 = vpop.eup %1550  ;;  %v695_v58 = vmul.f32 1.442695, %v682_v54  ;;  %708 = vadd.xlane.f32.xlu2 %v707_v56  ;;  %v919_v54 = vld [vmem:[%s1884_s10] sm:$0xf] }
 0x2b1   : > { %v693_v59 = vmul.f32 1.442695, %v681_v55  ;;  %v710_v60 = vsel %vm457_vm2, %v1551_v57, 0.0  ;;  %v946_v55 = vsel %vm754_vm4, %v919_v54, 0 }
 0x2b2   : > { %v1553_v61 = vpop.eup %1552  ;;  %1554 = vpow2.f32 %v695_v58  ;;  %711 = vadd.xlane.f32.xlu1 %v710_v60 }
 0x2b3   : > { %v733_v62 = vmul.f32 %v1553_v61, %v1545_v13  ;;  %1556 = vpow2.f32 %v693_v59  ;;  %v673_v63 = vpop.xlane.xlu1 %672 }
 0x2b4   : > { %v683_v0 = vsub.f32 %v651_v27, %v673_v63  ;;  %v921_v63 = vld [vmem:[%s1884_s10 + $0x4] sm:$0xf] }
 0x2b5   : > { %v741_v1 = vpack.c.bf16 %v733_v62, %v733_v62  ;;  %v814_v2 = vpop.permute.xlu2 %813 }
 0x2b6   : > { %v697_v3 = vmul.f32 1.442695, %v683_v0  ;;  %v819_v6 = vsel %vm754_vm4, %v814_v2, 0  ;;  %v926_v0 = vsel %vm754_vm4, %v921_v63, 0 }
 0x2b7   : > { %1397 = vmatmul.msk.bf16.vlgmr.msra.gmra.mxu1 %vm457_vm2, %v741_v1  ;;  %828 = vmatpush.bf16.msrb.mxu0 %v819_v6  ;;  %v963_v1 = vld [vmem:[%s1884_s10 + $0x8] sm:$0xf] }
 0x2b8   : > { %v2004_v7 = vpop.eup %1554  ;;  %1558 = vpow2.f32 %v697_v3  ;;  %v968_v2 = vsel %vm754_vm4, %v963_v1, 0 }
 0x2b9   : > { %v1557_v8 = vpop.eup %1556  ;;  %v716_v9 = vsel %vm457_vm2, %v2004_v7, 0.0 }
 0x2ba   : > { %v713_v10 = vsel %vm457_vm2, %v1557_v8, 0.0  ;;  %717 = vadd.xlane.f32.xlu1 %v716_v9 }
 0x2bb   : > { %714 = vadd.xlane.f32.xlu0 %v713_v10 }
 0x2be   : > { %v1559_v11 = vpop.eup %1558 }
 0x2bf   : > { %v719_v12 = vsel %vm457_vm2, %v1559_v11, 0.0 }
 0x2c0   : > { %720 = vadd.xlane.f32.xlu2 %v719_v12 }
 0x2c1   : > { %v772_v13 = vpop.permute.xlu0 %771 }
 0x2c2   : > { %v777_v14 = vsel %vm754_vm4, %v772_v13, 0 }
 0x2c3   : > { %786 = vmatpush.bf16.msra.mxu2 %v777_v14 }
 0x2cf   : > { %834 = vrot.lane.b32.xlu0 %v1935_v39, %s1741_s30 }
 0x2d3   : > { %855 = vrot.lane.b32.xlu1 %v1922_v30, %s1741_s30 }
 0x2d7   : > { %897 = vrot.lane.b32.xlu0 %v1931_v37, %s1741_s30 }
 0x2d8   : > { %876 = vrot.lane.b32.xlu2 %v1933_v38, %s1741_s30 }
 0x2ec   : > { %v706_v15 = vpop.xlane.xlu0 %705 }
 0x2ed   : > { %1560 = vrcp.f32 %v706_v15 }
 0x2ee   : > { %v676_v16 = vpop.xlane.xlu2 %675 }
 0x2ef   : > { %v684_v18 = vsub.f32 %v652_v43, %v676_v16 }
 0x2f1   : > { %v699_v19 = vmul.f32 1.442695, %v684_v18 }
 0x2f3   : > { %v1561_v20 = vpop.eup %1560  ;;  %1562 = vpow2.f32 %v699_v19 }
 0x2f4   : > { %v734_v21 = vmul.f32 %v1561_v20, %v1993_v42 }
 0x2f6   : > { %v742_v22 = vpack.c.bf16 %v734_v21, %v734_v21 }
 0x2f8   : > { %1398 = vmatmul.msk.bf16.vlgmr.msra.gmra.mxu2 %vm457_vm2, %v742_v22 }
 0x2f9   : > { %v1563_v39 = vpop.eup %1562 }
 0x2fa   : > { %v722_v30 = vsel %vm457_vm2, %v1563_v39, 0.0 }
 0x2fd   : > { %723 = vadd.xlane.f32.xlu1 %v722_v30 }
 0x323   : > { %v709_v37 = vpop.xlane.xlu2 %708 }
 0x324   : > { %1564 = vrcp.f32 %v709_v37 }
 0x325   : > { %v712_v23 = vpop.xlane.xlu1 %711 }
 0x326   : > { %1566 = vrcp.f32 %v712_v23 }
 0x32a   : > { %v1565_v38 = vpop.eup %1564 }
 0x32b   : > { %v735_v24 = vmul.f32 %v1565_v38, %v1549_v47 }
 0x32c   : > { %v1567_v25 = vpop.eup %1566 }
 0x32d   : > { %v743_v26 = vpack.c.bf16 %v735_v24, %v735_v24  ;;  %v736_v27 = vmul.f32 %v1567_v25, %v1551_v57  ;;  %v718_v34 = vpop.xlane.xlu1 %717  ;;  %v1537_v24 = vld [vmem:[%s1870_s29 + $0x1] ss:$0 sm:$0xff] }
 0x32e   : > { %v715_v32 = vpop.xlane.xlu0 %714 }
 0x32f   : > { %v744_v28 = vpack.c.bf16 %v736_v27, %v736_v27  ;;  %1399 = vmatmul.msk.bf16.vlgmr.msra.gmra.mxu3 %vm457_vm2, %v743_v26 }
 0x331   : > { %1400 = vmatmul.msk.bf16.vlgmr.msrb.gmra.mxu0 %vm457_vm2, %v744_v28 }
 0x333   : > { %v721_v31 = vpop.xlane.xlu2 %720 }
 0x334   : > { %1568 = vrcp.f32 %v721_v31  ;;  %v767_v33 = vpop.f32.mrf.mxu1 }
 0x335   : > { %1570 = vrcp.f32 %v715_v32 }
 0x336   : > { %1572 = vrcp.f32 %v718_v34 }
 0x33a   : > { %v1569_v35 = vpop.eup %1568 }
 0x33b   : > { %v739_v36 = vmul.f32 %v1569_v35, %v1559_v11  ;;  %v877_v40 = vpop.permute.xlu2 %876  ;;  %v1571_v43 = vpop.eup %1570 }
 0x33c   : > { %v882_v41 = vsel %vm754_vm4, %v877_v40, 0  ;;  %v769_v42 = vpop.f32.mrf.mxu1  ;;  %v737_v45 = vmul.f32 %v1571_v43, %v1557_v8  ;;  %v1573_v46 = vpop.eup %1572  ;;  %v987_v8 = vld [vmem:[%s1884_s10 + $0xc] sm:$0xf] }
 0x33d   : > { %v747_v44 = vpack.c.bf16 %v739_v36, %v739_v36  ;;  %891 = vmatpush.bf16.msrb.mxu3 %v882_v41  ;;  %v738_v29 = vmul.f32 %v1573_v46, %v2004_v7  ;;  %v992_v10 = vsel %vm754_vm4, %v987_v8, 0 }
 0x33e   : > { %v745_v49 = vpack.c.bf16 %v737_v45, %v737_v45  ;;  %v1742_v45 = vmov 32.0  }
 0x33f   : > { %v746_v52 = vpack.c.bf16 %v738_v29, %v738_v29 }
 0x340   : > { %1403 = vmatmul.msk.bf16.vlgmr.msrb.gmra.mxu3 %vm457_vm2, %v747_v44 }
 0x341   : > { %v835_v17 = vpop.permute.xlu0 %834  ;;  %977 = vmatpush.bf16.msra.mxu3 %v968_v2 }
 0x342   : > { %v840_v48 = vsel %vm754_vm4, %v835_v17, 0 }
 0x343   : > { %849 = vmatpush.bf16.msrb.mxu1 %v840_v48 }
 0x345   : > { %v856_v50 = vpop.permute.xlu1 %855 }
 0x346   : > { %1401 = vmatmul.msk.bf16.vlgmr.msrb.gmra.mxu1 %vm457_vm2, %v745_v49  ;;  %v861_v51 = vsel %vm754_vm4, %v856_v50, 0 }
 0x347   : > { %870 = vmatpush.bf16.msrb.mxu2 %v861_v51  ;;  %935 = vmatpush.bf16.msra.mxu1 %v926_v0 }
 0x349   : > { %v898_v47 = vpop.permute.xlu0 %897 }
 0x34a   : > { %v903_v53 = vsel %vm754_vm4, %v898_v47, 0  ;;  %1402 = vmatmul.msk.bf16.vlgmr.msrb.gmra.mxu2 %vm457_vm2, %v746_v52 }
 0x34b   : > { %912 = vmatpush.bf16.msra.mxu0 %v903_v53  ;;  %955 = vmatpush.bf16.msra.mxu2 %v946_v55 }
 0x34f   : > { %1001 = vmatpush.bf16.msrb.mxu0 %v992_v10 }
 0x370   : > { %v724_v56 = vpop.xlane.xlu1 %723 }
 0x371   : > { %1574 = vrcp.f32 %v724_v56 }
 0x372   : > { %1576 = vrcp.f32 %v1742_v45 }
 0x377   : > { %v1575_v57 = vpop.eup %1574 }
 0x378   : > { %v740_v58 = vmul.f32 %v1575_v57, %v1563_v39  ;;  %v1577_v46 = vpop.eup %1576 }
 0x379   : > { %v1022_v17 = vmul.f32 32.0, %v1577_v46  ;;  %vm1026_vm5 = vweird.f32 %v1577_v46 }
 0x37a   : > { %v748_v59 = vpack.c.bf16 %v740_v58, %v740_v58  ;;  %v1448_v58 = vld [vmem:[%s1889_s17 + $0x8] sm:$0xff] }
 0x37b   : > { %v788_v60 = vpop.f32.mrf.mxu2  ;;  %v1023_v48 = vsub.f32 1.0, %v1022_v17  ;;  %1099 = vmatpush.bf16.msrb.mxu1 %v1448_v58 }
 0x37c   : > { %v918_v61 = vpack.c.bf16 %v788_v60, %v767_v33  ;;  %1404 = vmatmul.msk.bf16.vlgmr.msra.gmra.mxu0 %vm457_vm2, %v748_v59 }
 0x37d   : > { %v1024_v49 = vmul.f32 %v1577_v46, %v1023_v48 }
 0x37e   : > { %1406 = vmatmul.msk.bf16.vlgmr.msra.gmra.mxu2 %vm457_vm2, %v918_v61 }
 0x383   : > { %v790_v62 = vpop.f32.mrf.mxu2 }
 0x384   : > { %v1447_v62 = vld [vmem:[%s1889_s17] sm:$0xff] }
 0x385   : > { %1100 = vmatpush.bf16.msrb.mxu1 %v1447_v62 }
 0x3ae   : > { %v830_v3 = vpop.f32.mrf.mxu0 }
 0x3b2   : > { %v809_v6 = vpop.f32.mrf.mxu3 }
 0x3b3   : > { %v920_v7 = vpack.c.bf16 %v830_v3, %v809_v6 }
 0x3b5   : > { %1405 = vmatmul.msk.bf16.vlgmr.msra.gmra.mxu1 %vm457_vm2, %v920_v7 }
 0x3b6   : > { %v832_v9 = vpop.f32.mrf.mxu0 }
 0x3ba   : > { %v811_v11 = vpop.f32.mrf.mxu3 }
 0x3c3   : > { %v851_v12 = vpop.f32.mrf.mxu1  ;;  %v893_v13 = vpop.f32.mrf.mxu3 }
 0x3cb   : > { %v853_v14 = vpop.f32.mrf.mxu1  ;;  %v895_v15 = vpop.f32.mrf.mxu3 }
 0x3cd   : > { %v872_v16 = vpop.f32.mrf.mxu2 }
 0x3ce   : > { %v962_v18 = vpack.c.bf16 %v872_v16, %v851_v12  ;;  %v1538_v16 = vld [vmem:[%s1870_s29 + $0x4] ss:$0 sm:$0xff] }
 0x3d0   : > { %1407 = vmatmul.msk.bf16.vlgmr.msra.gmra.mxu3 %vm457_vm2, %v962_v18 }
 0x3d5   : > { %v874_v19 = vpop.f32.mrf.mxu2 }
 0x3f9   : > { %v914_v20 = vpop.f32.mrf.mxu0 }
 0x3fa   : > { %v986_v21 = vpack.c.bf16 %v914_v20, %v893_v13 }
 0x3fc   : > { %1408 = vmatmul.msk.bf16.vlgmr.msrb.gmra.mxu0 %vm457_vm2, %v986_v21  ;;  %v1539_v21 = vld [vmem:[%s1870_s29 + $0x5] ss:$0 sm:$0xff] }
 0x401   : > { %v916_v22 = vpop.f32.mrf.mxu0  ;;  %v957_v30 = vpop.f32.mrf.mxu2 }
 0x409   : > { %v959_v31 = vpop.f32.mrf.mxu2 }
 0x432   : > { %v937_v39 = vpop.f32.mrf.mxu1 }
 0x433   : > { %v958_v23 = vadd.f32 %v957_v30, %v937_v39 }
 0x43a   : > { %v939_v27 = vpop.f32.mrf.mxu1 }
 0x43b   : > { %v960_v33 = vadd.f32 %v959_v31, %v939_v27  ;;  %v1449_v27 = vld [vmem:[%s1894_s19] sm:$0xff] }
 0x43c   : > { %v1540_v31 = vld [vmem:[%s1870_s29 + $0x2] ss:$0 sm:$0xff] }
 0x453   : > { %v979_v37 = vpop.f32.mrf.mxu3 }
 0x454   : > { %v984_v38 = vadd.f32 %v979_v37, %v958_v23 }
 0x45b   : > { %v981_v32 = vpop.f32.mrf.mxu3 }
 0x45c   : > { %v985_v35 = vadd.f32 %v981_v32, %v960_v33 }
 0x479   : > { %v1003_v25 = vpop.f32.mrf.mxu0 }
 0x47a   : > { %v1008_v26 = vadd.f32 %v1003_v25, %v984_v38  ;;  %v1451_v25 = vld [vmem:[%s1894_s19 + $0x10] sm:$0xff] }
 0x47c   : > { %v1011_v28 = vadd.f32 %v1537_v24, %v1008_v26  ;;  %v1450_v26 = vld [vmem:[%s1894_s19 + $0x8] sm:$0xff] }
 0x47e   : > { %v1013_v34 = vadd.f32 %v1011_v28, %v1897_v4  ;;  %v1025_v4 = vadd.f32 %v1577_v46, %v1024_v49 }
 0x480   : > { %v1015_v36 = vsel %vm419_vm1, %v1013_v34, 0.0  ;;  %v2050_v29 = vsel %vm1026_vm5, %v1577_v46, %v1025_v4 }
 0x481   : > { %v1005_v40 = vpop.f32.mrf.mxu0  ;;  %1016 = vadd.xlane.f32.xlu0 %v1015_v36 }
 0x482   : > { %v1009_v41 = vadd.f32 %v1005_v40, %v985_v35 }
 0x484   : > { %v1012_v42 = vadd.f32 %v1537_v24, %v1009_v41  ;;  %v1452_v24 = vld [vmem:[%s1894_s19 + $0x18] sm:$0xff]  ;;  %v1541_v41 = vld [vmem:[%s1870_s29 + $0x3] ss:$0 sm:$0xff] }
 0x485   : > { %1151 = vmatpush.bf16.msrb.mxu2 %v1452_v24 }
 0x486   : > { %v1014_v43 = vadd.f32 %v1012_v42, %v1899_v5 }
 0x488   : > { %v1018_v44 = vsel %vm419_vm1, %v1014_v43, 0.0 }
 0x489   : > { %1019 = vadd.xlane.f32.xlu1 %v1018_v44  ;;  %1152 = vmatpush.bf16.msrb.mxu2 %v1451_v25 }
 0x48d   : > { %1153 = vmatpush.bf16.msrb.mxu2 %v1450_v26 }
 0x491   : > { %1154 = vmatpush.bf16.msrb.mxu2 %v1449_v27 }
 0x4f4   : > { %v1017_v50 = vpop.xlane.xlu0 %1016 }
 0x4f5   : > { %v1028_v51 = vmul.f32 %v2050_v29, %v1017_v50 }
 0x4f7   : > { %v1030_v52 = vsub.f32 %v1013_v34, %v1028_v51 }
 0x4f9   : > { %v1032_v5 = vmul.f32 %v1030_v52, %v1030_v52 }
 0x4fb   : > { %v1034_v47 = vsel %vm419_vm1, %v1032_v5, 0.0 }
 0x4fc   : > { %1035 = vadd.xlane.f32.xlu1 %v1034_v47  ;;  %v1020_v53 = vpop.xlane.xlu1 %1019 }
 0x4fd   : > { %v1029_v54 = vmul.f32 %v2050_v29, %v1020_v53 }
 0x4ff   : > { %v1031_v55 = vsub.f32 %v1014_v43, %v1029_v54 }
 0x501   : > { %v1033_v56 = vmul.f32 %v1031_v55, %v1031_v55 }
 0x503   : > { %v1037_v57 = vsel %vm419_vm1, %v1033_v56, 0.0 }
 0x504   : > { %1038 = vadd.xlane.f32.xlu2 %v1037_v57 }
 0x56f   : > { %v1036_v59 = vpop.xlane.xlu1 %1035 }
 0x570   : > { %v1040_v60 = vmul.f32 %v1036_v59, %v2050_v29 }
 0x572   : > { %v1042_v61 = vadd.f32 1e-05, %v1040_v60 }
 0x574   : > { %1578 = vrsqrt.f32 %v1042_v61  ;;  %vm1050_vm7 = vweird.f32 %v1042_v61 }
 0x577   : > { %v1039_v63 = vpop.xlane.xlu2 %1038 }
 0x578   : > { %v1041_v0 = vmul.f32 %v1039_v63, %v2050_v29 }
 0x57a   : > { %v1579_v1 = vpop.eup %1578  ;;  %v1043_v2 = vadd.f32 1e-05, %v1041_v0 }
 0x57b   : > { %v1045_v3 = vmul.f32 %v1579_v1, %v1042_v61  ;;  %vm1051_vm6 = vweird.f32 %v1579_v1 }
 0x57c   : > { %1580 = vrsqrt.f32 %v1043_v2  ;;  %vm1052_vm8 = vmor %vm1050_vm7, %vm1051_vm6  ;;  %vm1060_vm10 = vweird.f32 %v1043_v2 }
 0x57d   : > { %v1046_v6 = vmul.f32 %v1579_v1, %v1045_v3 }
 0x57f   : > { %v1047_v7 = vmul.f32 0.5, %v1046_v6 }
 0x581   : > { %v1048_v8 = vsub.f32 1.5, %v1047_v7 }
 0x582   : > { %v1581_v9 = vpop.eup %1580 }
 0x583   : > { %v1049_v10 = vmul.f32 %v1579_v1, %v1048_v8  ;;  %v1055_v11 = vmul.f32 %v1581_v9, %v1043_v2  ;;  %vm1061_vm9 = vweird.f32 %v1581_v9 }
 0x584   : > { %vm1062_vm11 = vmor %vm1060_vm10, %vm1061_vm9 }
 0x585   : > { %v1056_v12 = vmul.f32 %v1581_v9, %v1055_v11  ;;  %v1053_v13 = vsel %vm1052_vm8, %v1579_v1, %v1049_v10 }
 0x586   : > { %v1064_v18 = vmul.f32 %v1053_v13, %v1030_v52 }
 0x587   : > { %v1057_v14 = vmul.f32 0.5, %v1056_v12  ;;  %v1543_v12 = vld [vmem:[%s1870_s29 + $0x7] ss:$0 sm:$0xff] }
 0x588   : > { %v1067_v22 = vmul.f32 %v1538_v16, %v1064_v18 }
 0x589   : > { %v1058_v15 = vsub.f32 1.5, %v1057_v14 }
 0x58a   : > { %v1070_v37 = vadd.f32 %v1539_v21, %v1067_v22 }
 0x58b   : > { %v1059_v19 = vmul.f32 %v1581_v9, %v1058_v15 }
 0x58d   : > { %v1063_v20 = vsel %vm1062_vm11, %v1581_v9, %v1059_v19  ;;  %v1542_v9 = vld [vmem:[%s1870_s29 + $0x6] ss:$0 sm:$0xff] }
 0x58e   : > { %v1065_v39 = vmul.f32 %v1063_v20, %v1031_v55 }
 0x590   : > { %v1068_v30 = vmul.f32 %v1538_v16, %v1065_v39 }
 0x592   : > { %v1071_v23 = vadd.f32 %v1539_v21, %v1068_v30 }
 0x594   : > { %v1072_v38 = vpack.c.bf16 %v1071_v23, %v1070_v37 }
 0x596   : > { %1417 = vmatmul.msk.bf16.vlgmr.msrb.gmra.mxu1 %vm419_vm1, %v1072_v38 }
 0x613   : > { %v1102_v28 = vpop.f32.mrf.mxu1 }
 0x614   : > { %v1103_v32 = vadd.f32 %v1540_v31, %v1102_v28 }
 0x616   : > { %v1107_v35 = vmax.f32 %v1103_v32, 0.0 }
 0x61b   : > { %v1104_v33 = vpop.f32.mrf.mxu1 }
 0x61c   : > { %v1105_v34 = vadd.f32 %v1540_v31, %v1104_v33 }
 0x61e   : > { %v1108_v36 = vmax.f32 %v1105_v34, 0.0 }
 0x620   : > { %v1109_v40 = vpack.c.bf16 %v1108_v36, %v1107_v35 }
 0x622   : > { %1434 = vmatmul.msk.bf16.vlgmr.msrb.gmra.mxu2 %vm1143_vm12, %v1109_v40 }
 0x6a5   : > { %v1156_v42 = vpop.f32.mrf.mxu2 }
 0x6a6   : > { %v1157_v43 = vadd.f32 %v1541_v41, %v1156_v42 }
 0x6a8   : > { %v1161_v44 = vadd.f32 %v1157_v43, %v1070_v37 }
 0x6aa   : > { %v1163_v45 = vsel %vm419_vm1, %v1161_v44, 0.0 }
 0x6ab   : > { %1164 = vadd.xlane.f32.xlu1 %v1163_v45 }
 0x6ad   : > { %v1158_v46 = vpop.f32.mrf.mxu2 }
 0x6ae   : > { %v1159_v17 = vadd.f32 %v1541_v41, %v1158_v46 }
 0x6b0   : > { %v1162_v48 = vadd.f32 %v1159_v17, %v1071_v23 }
 0x6b2   : > { %v1166_v49 = vsel %vm419_vm1, %v1162_v48, 0.0 }
 0x6b3   : > { %1167 = vadd.xlane.f32.xlu1 %v1166_v49 }
 0x71e   : > { %v1165_v4 = vpop.xlane.xlu1 %1164 }
 0x71f   : > { %v1169_v50 = vmul.f32 %v1165_v4, %v2050_v29 }
 0x721   : > { %v1171_v51 = vsub.f32 %v1161_v44, %v1169_v50 }
 0x723   : > { %v1173_v52 = vmul.f32 %v1171_v51, %v1171_v51 }
 0x725   : > { %v1175_v5 = vsel %vm419_vm1, %v1173_v52, 0.0 }
 0x726   : > { %1176 = vadd.xlane.f32.xlu1 %v1175_v5  ;;  %v1168_v47 = vpop.xlane.xlu1 %1167 }
 0x727   : > { %v1170_v53 = vmul.f32 %v1168_v47, %v2050_v29 }
 0x729   : > { %v1172_v54 = vsub.f32 %v1162_v48, %v1170_v53 }
 0x72b   : > { %v1174_v55 = vmul.f32 %v1172_v54, %v1172_v54 }
 0x72d   : > { %v1178_v56 = vsel %vm419_vm1, %v1174_v55, 0.0 }
 0x72e   : > { %1179 = vadd.xlane.f32.xlu1 %v1178_v56 }
 0x799   : > { %v1177_v57 = vpop.xlane.xlu1 %1176 }
 0x79a   : > { %v1181_v58 = vmul.f32 %v1177_v57, %v2050_v29 }
 0x79c   : > { %v1183_v59 = vadd.f32 1e-05, %v1181_v58 }
 0x79e   : > { %1582 = vrsqrt.f32 %v1183_v59  ;;  %vm1191_vm14 = vweird.f32 %v1183_v59 }
 0x7a1   : > { %v1180_v60 = vpop.xlane.xlu1 %1179 }
 0x7a2   : > { %v1182_v61 = vmul.f32 %v1180_v60, %v2050_v29 }
 0x7a4   : > { %v1583_v62 = vpop.eup %1582  ;;  %v1184_v63 = vadd.f32 1e-05, %v1182_v61 }
 0x7a5   : > { %v1186_v0 = vmul.f32 %v1583_v62, %v1183_v59  ;;  %vm1192_vm13 = vweird.f32 %v1583_v62 }
 0x7a6   : > { %1584 = vrsqrt.f32 %v1184_v63  ;;  %vm1193_vm15 = vmor %vm1191_vm14, %vm1192_vm13  ;;  %vm1201_vm2 = vweird.f32 %v1184_v63 }
 0x7a7   : > { %v1187_v1 = vmul.f32 %v1583_v62, %v1186_v0 }
 0x7a9   : > { %v1188_v2 = vmul.f32 0.5, %v1187_v1 }
 0x7ab   : > { %v1189_v3 = vsub.f32 1.5, %v1188_v2 }
 0x7ac   : > { %v1585_v6 = vpop.eup %1584 }
 0x7ad   : > { %v1190_v7 = vmul.f32 %v1583_v62, %v1189_v3  ;;  %v1196_v8 = vmul.f32 %v1585_v6, %v1184_v63  ;;  %vm1202_vm0 = vweird.f32 %v1585_v6 }
 0x7ae   : > { %vm1203_vm3 = vmor %vm1201_vm2, %vm1202_vm0 }
 0x7af   : > { %v1194_v10 = vsel %vm1193_vm15, %v1583_v62, %v1190_v7  ;;  %v1197_v11 = vmul.f32 %v1585_v6, %v1196_v8 }
 0x7b0   : > { %v1205_v13 = vmul.f32 %v1194_v10, %v1171_v51 }
 0x7b1   : > { %v1198_v29 = vmul.f32 0.5, %v1197_v11 }
 0x7b2   : > { %v1208_v14 = vmul.f32 %v1542_v9, %v1205_v13 }
 0x7b3   : > { %v1199_v15 = vsub.f32 1.5, %v1198_v29 }
 0x7b4   : > { %v1211_v16 = vadd.f32 %v1543_v12, %v1208_v14 }
 0x7b5   : > { %v1200_v18 = vmul.f32 %v1585_v6, %v1199_v15 }
 0x7b7   : > { %v1204_v19 = vsel %vm1203_vm3, %v1585_v6, %v1200_v18 }
 0x7b8   : > { %v1206_v20 = vmul.f32 %v1204_v19, %v1172_v54  ;;  %1216 = sbr.rel (%p1435_p3) target bundleno = 1983 (0x7bf), region = 60 }
 0x7ba   : > { %v1209_v21 = vmul.f32 %v1542_v9, %v1206_v20 }
 0x7bc   : > { %v1212_v22 = vadd.f32 %v1543_v12, %v1209_v21 }
 0x7bd   : > { %1217 = vst.msk [vmem:[#allocation2] sm:$0xff] %vm419_vm1, %v1211_v16 }
 0x7be   : > { %1218 = vst.msk [vmem:[#allocation2 + $0x8] sm:$0xff] %vm419_vm1, %v1212_v22 }
 0x7bf PF: > { %p1436_p4 = scmp.ne.s32.totalorder %s1724_s24, 1 }
 0x7c1   : > { %1222 = sbr.rel (%p1436_p4) target bundleno = 1992 (0x7c8), region = 64 }
 0x7c6   : > { %1223 = vst.msk [vmem:[#allocation8] sm:$0xff] %vm419_vm1, %v1211_v16 }
 0x7c7   : > { %1224 = vst.msk [vmem:[#allocation8 + $0x8] sm:$0xff] %vm419_vm1, %v1212_v22 }
 0x7c8 PF: > { %p1474_p5 = scmp.eq.s32.totalorder %s1362_s27, 1  ;;  %s1235_s7 = sshll.u32 %s2114_s6, 4  ;;  %s1236_s7 = int_to_ptr.hbm [resolvable:$true] %s1235_s7 }
 0x7c9   : > { %s1743_s9 = smov [#allocation8]   ;;  %s1744_s11 = smov 128  }
 0x7ca   : > { %s1233_s10 = sshll.u32 %s1743_s9, 4  ;;  %s1745_s12 = smov 8   ;;  %s1234_s10 = int_to_ptr.vmem [resolvable:$true] %s1233_s10 }
 0x7cb   : > { %1460 = dma.vmem_to_hbm [thread:$0]  (%p1474_p5), %s1234_s10, 256, %s1236_s7, [#allocation5], %s1744_s11, %s1744_s11, %s1745_s12  }
 0x7cc   : > { %1707 = dma.done.wait (%p1474_p5), [#allocation5], 256  }
 0x7cd   : > { %1709 = vsyncadd (%p1474_p5), [#allocation5], 4294967040 }
 0x7ce PF: > { %s21_s26 = sadd.s32 1, %s1732_s26   ;;  %s2121_s21 = smov %s1716_s22 }
 0x7cf   : > { %p18_p6 = scmp.ge.s32.totalorder %s21_s26, 4   ;;  %s2122_s22 = smov %s1720_s23 }
 0x7d0   : > { %s2123_s23 = smov %s1855_s20  ;;  %s2124_s24 = smov %s1728_s25 }
 0x7d1   : > { %s2125_s25 = smov %s2127_s13  ;;  %20 = sbr.rel (!%p18_p6) target bundleno = 6 (0x6), region = 112 }
 0x7d6   :  { %1252 = vsyncpa [#allocation4], 1 }
 0x7d7   :  { %1254 = vsyncpa [#allocation4 + $0x1], 1 }
 0x7d8   :  { %1255 = vsyncpa [#allocation7], 1 }
 0x7d9   :  { %1257 = vsyncpa [#allocation7 + $0x1], 1 }
 0x7da   :  { %1258 = vsyncpa [#allocation5], 1 }
 0x7db   :  { %1260 = vsyncpa [#allocation5 + $0x1], 1 }

</bundles_post_ra>
